<compile_context>
chip_gen: v5e
topology: v5e:2x2
jax: 0.10.0
libtpu: 0.0.40
codegen_flags: <defaults>
</compile_context>

<pallas_src>
import functools
import math

import jax
import jax.numpy as jnp
import numpy as np
from jax.experimental import pallas as pl
from jax.experimental.pallas import tpu as pltpu


_PI = float(np.pi)


def _round_up(v, m):
    return (v + m - 1) // m * m


def _cdiv(a, b):
    return -(-a // b)


# ---------------------------------------------------------------------------
# Kernels
# ---------------------------------------------------------------------------

def _npu_kernel_scratch(gpack_ref, x_ref, w_ref, o_ref, fe_sc, *, eps):
    """Grid = (batch tiles, out-dim tiles); out-dim axis innermost ("arbitrary").

    gpack_ref : (3, Din)     rows = [clamp(g,0,1), 1-g, pi*g]        (f32)
    x_ref     : (TB, Din)    batch tile, resident across the out-dim axis (f32)
    w_ref     : (Din, 2*TD)  packed, pre-transposed [W_real | W_im] tile
    o_ref     : (TB, TD)     lane-dense output tile (f32)
    fe_sc     : (2*TB, Din)  scratch: rows [0:TB]=log(r), [TB:2TB]=pi*g*(x<0)
                             (dtype = matmul compute dtype: f32 or bf16)
    """
    tb = x_ref.shape[0]
    td = o_ref.shape[1]

    # Element-wise front end depends only on the batch tile: compute it once
    # per batch tile (the out-dim axis j is the inner grid axis).
    @pl.when(pl.program_id(1) == 0)
    def _():
        x = x_ref[...]
        g = gpack_ref[0:1, :]
        omg = gpack_ref[1:2, :]                 # 1 - g
        pig = gpack_ref[2:3, :]                 # pi * g
        r = g * (jnp.abs(x) + eps) + omg        # matches the PyTorch arithmetic
        fe_sc[0:tb, :] = jnp.log(r).astype(fe_sc.dtype)
        fe_sc[tb:2 * tb, :] = (pig * (x < 0.0).astype(jnp.float32)).astype(fe_sc.dtype)

    # Single fused MXU call: [log(r); k] @ [W_real | W_im].  Plain MKxKN —
    # the weight tile was pre-transposed at parameter-setup time, so Mosaic
    # emits no per-step transpose.
    res = jnp.dot(fe_sc[...], w_ref[...],
                  preferred_element_type=jnp.float32)       # (2*TB, 2*TD) f32

    lr_wr = res[0:tb, 0:td]
    lr_wi = res[0:tb, td:]
    k_wr = res[tb:2 * tb, 0:td]
    k_wi = res[tb:2 * tb, td:]
    # pi is already folded into k, so the epilogue is just sub/add + exp*cos.
    o_ref[...] = jnp.exp(lr_wr - k_wi) * jnp.cos(lr_wi + k_wr)


def _npu_kernel_direct(gpack_ref, x_ref, w_ref, o_ref, *, eps):
    """Scratch-free variant used when nb == 1 or nd == 1.

    Recomputing the cheap (VPU/EUP) front end per grid step skips the VMEM
    store/reload round trip and lets BOTH grid axes be marked "parallel"
    (megacore-shardable on v7x even with a single batch tile).
    """
    tb = x_ref.shape[0]
    td = o_ref.shape[1]

    x = x_ref[...]
    g = gpack_ref[0:1, :]
    omg = gpack_ref[1:2, :]
    pig = gpack_ref[2:3, :]
    r = g * (jnp.abs(x) + eps) + omg
    logr = jnp.log(r).astype(w_ref.dtype)
    k = (pig * (x < 0.0).astype(jnp.float32)).astype(w_ref.dtype)

    lhs = jnp.concatenate([logr, k], axis=0)                # (2*TB, Din)
    res = jnp.dot(lhs, w_ref[...],
                  preferred_element_type=jnp.float32)       # (2*TB, 2*TD) f32

    lr_wr = res[0:tb, 0:td]
    lr_wi = res[0:tb, td:]
    k_wr = res[tb:2 * tb, 0:td]
    k_wi = res[tb:2 * tb, td:]
    o_ref[...] = jnp.exp(lr_wr - k_wi) * jnp.cos(lr_wi + k_wr)


# ---------------------------------------------------------------------------
# Parameter packing (one-time, at setup — NOT per forward call)
# ---------------------------------------------------------------------------

def prepare_npu_params(W_real, W_im, g, *, block_d=256, dtype=jnp.float32):
    """Pack / pre-transpose the NPU parameters.

    Returns a dict with:
      w_cat   : (nd, Din, 2*td)  pre-transposed per-tile [W_real | W_im] columns
      gpack   : (3, Din) f32     [clamp(g,0,1), 1-clamp(g,0,1), pi*clamp(g,0,1)]
      out_dim : unpadded out_dim (for slicing the kernel output)
    Set dtype=jnp.bfloat16 to feed the MXU bf16 (f32 accumulation is kept).
    """
    Dout, Din = W_real.shape
    assert W_im.shape == (Dout, Din)
    assert g.shape == (Dout,)
    # Like the PyTorch module, g (out_dim) broadcasts against the input's last
    # dim, which requires in_dim == out_dim.
    assert Din == Dout, "NeuralPowerUnitCell's g broadcast requires in_dim == out_dim"

    # Out-dim tile: multiple of 128 (unmasked lane-dense stores); pad Dout up
    # instead of collapsing to a single oversized tile.
    block_d = max(128, _round_up(block_d, 128))
    td = min(block_d, _round_up(Dout, 128))
    Dout_p = _round_up(Dout, td)
    nd = Dout_p // td

    def pack(W):
        Wp = jnp.zeros((Dout_p, Din), jnp.float32).at[:Dout].set(W.astype(jnp.float32))
        # (Dout_p, Din) -> (Din, Dout_p) -> (Din, nd, td) -> (nd, Din, td)
        return jnp.transpose(Wp.T.reshape(Din, nd, td), (1, 0, 2))

    w_cat = jnp.concatenate([pack(W_real), pack(W_im)], axis=2).astype(dtype)

    g_clip = jnp.clip(g.astype(jnp.float32), 0.0, 1.0)
    gpack = jnp.stack(
        [g_clip, 1.0 - g_clip, jnp.float32(_PI) * g_clip], axis=0)   # (3, Din)

    return dict(w_cat=w_cat, gpack=gpack, out_dim=Dout)


# ---------------------------------------------------------------------------
# Forward wrapper
# ---------------------------------------------------------------------------

def _footprint_bytes(tb, td, Din, fe_bytes, w_bytes, use_scratch):
    b = 2 * tb * Din * 4                     # x tile (f32), double-buffered
    b += 2 * Din * (2 * td) * w_bytes        # packed weight tile, double-buffered
    b += 2 * tb * td * 4                     # output tile, double-buffered
    b += 2 * 3 * Din * 4                     # gpack, double-buffered
    if use_scratch:
        b += 2 * tb * Din * fe_bytes         # [log(r); k] scratch
    b += (2 * tb) * (2 * td) * 4             # f32 matmul result temporary
    b += 2 * tb * Din * 4                    # front-end temporaries headroom
    return b


def _vmem_capacity_bytes():
    try:
        return int(pltpu.get_tpu_info().vmem_capacity_bytes)
    except Exception:
        return 64 * 1024 * 1024              # v7x floor (smallest per-TC VMEM)


def npu_forward(x, params, *, eps=1e-16, block_b=512):
    """x: (B, in_dim); params from prepare_npu_params."""
    w_cat = params["w_cat"]
    gpack = params["gpack"]
    Dout = params["out_dim"]

    nd, Din, two_td = w_cat.shape
    td = two_td // 2
    Dout_p = nd * td
    B = x.shape[0]
    x = x.astype(jnp.float32)

    fe_bytes = jnp.dtype(w_cat.dtype).itemsize    # matmul compute dtype bytes
    w_bytes = fe_bytes

    # --- batch tiling: balanced tiles, VMEM-budget aware (v7x = 64 MiB/TC) ---
    vmem_cap = _vmem_capacity_bytes()
    budget = int(vmem_cap * 0.75)
    nb_target = max(1, _cdiv(B, block_b))
    tb = min(_round_up(_cdiv(B, nb_target), 8), _round_up(B, 8))
    while tb > 8 and _footprint_bytes(tb, td, Din, fe_bytes, w_bytes, True) > budget:
        tb = _round_up(max(8, tb // 2), 8)

    Bp = _round_up(B, tb)
    if Bp != B:
        # padded rows give r = g*eps + (1-g) > 0, so log(r) stays finite.
        x = jnp.pad(x, ((0, Bp - B), (0, 0)))
    nb = Bp // tb

    # Scratch (front-end carried across the out-dim axis) only pays off when
    # both grid axes have extent > 1.
    use_scratch = (nb > 1) and (nd > 1)

    footprint = _footprint_bytes(tb, td, Din, fe_bytes, w_bytes, use_scratch)
    vmem_limit = int(min(max(2 * footprint, 32 * 1024 * 1024),
                         vmem_cap - 2 * 1024 * 1024))

    in_specs = [
        pl.BlockSpec((3, Din), lambda i, j: (0, 0)),                 # gpack (resident)
        pl.BlockSpec((tb, Din), lambda i, j: (i, 0)),                # x (resident over j)
        pl.BlockSpec((None, Din, two_td), lambda i, j: (j, 0, 0)),   # packed weights
    ]
    out_spec = pl.BlockSpec((tb, td), lambda i, j: (i, j))

    if use_scratch:
        kernel = functools.partial(_npu_kernel_scratch, eps=eps)
        scratch_shapes = [pltpu.VMEM((2 * tb, Din), w_cat.dtype)]
        dim_sem = ("parallel", "arbitrary")
    else:
        kernel = functools.partial(_npu_kernel_direct, eps=eps)
        scratch_shapes = []
        dim_sem = ("parallel", "parallel")

    out = pl.pallas_call(
        kernel,
        out_shape=jax.ShapeDtypeStruct((Bp, Dout_p), jnp.float32),
        grid_spec=pltpu.PrefetchScalarGridSpec(
            num_scalar_prefetch=0,
            grid=(nb, nd),                    # batch outer, out-dim inner
            in_specs=in_specs,
            out_specs=out_spec,
            scratch_shapes=scratch_shapes,
        ),
        compiler_params=pltpu.CompilerParams(
            dimension_semantics=dim_sem,
            vmem_limit_bytes=vmem_limit,
        ),
    )(gpack, x, w_cat)

    return out[:B, :Dout]


# ---------------------------------------------------------------------------
# Pure-JAX reference (mirrors the PyTorch forward)
# ---------------------------------------------------------------------------

def npu_forward_ref(x, W_real, W_im, g, *, eps=1e-16):
    g = jnp.clip(g.astype(jnp.float32), 0.0, 1.0)
    x = x.astype(jnp.float32)
    r = g * (jnp.abs(x) + eps) + (1.0 - g)
    k = g * (x < 0).astype(jnp.float32)
    pi = jnp.float32(_PI)
    exp_arg = jnp.log(r) @ W_real.T - pi * (k @ W_im.T)
    cos_arg = jnp.log(r) @ W_im.T + pi * (k @ W_real.T)
    return jnp.exp(exp_arg) * jnp.cos(cos_arg)


def xavier_uniform(key, out_dim, in_dim):
    bound = math.sqrt(6.0 / (in_dim + out_dim))
    return jax.random.uniform(key, (out_dim, in_dim), jnp.float32, -bound, bound)


if __name__ == "__main__":
    # Small shapes; in_dim == out_dim is required by the module's g broadcast.
    batch, in_dim, out_dim = 24, 256, 256

    key = jax.random.PRNGKey(0)
    k_x, k_wr, k_wi = jax.random.split(key, 3)

    x = jax.random.normal(k_x, (batch, in_dim), jnp.float32)
    W_real = xavier_uniform(k_wr, out_dim, in_dim)       # init.xavier_uniform_
    W_im = xavier_uniform(k_wi, out_dim, in_dim)         # init.xavier_uniform_
    g = jnp.full((out_dim,), 0.5, jnp.float32)           # init.constant_(g, 0.5)

    ref = np.asarray(npu_forward_ref(x, W_real, W_im, g))

    # 1) f32, multi-tile grid (3 batch tiles x 2 out-dim tiles) -> scratch kernel.
    params_f32 = prepare_npu_params(W_real, W_im, g, block_d=128)
    out_a = jax.block_until_ready(npu_forward(x, params_f32, block_b=8))
    np.testing.assert_allclose(np.asarray(out_a), ref, rtol=1e-3, atol=1e-3)

    # 2) f32, single batch/out-dim tile -> scratch-free direct kernel path.
    params_one = prepare_npu_params(W_real, W_im, g, block_d=256)
    out_b = jax.block_until_ready(npu_forward(x, params_one))
    np.testing.assert_allclose(np.asarray(out_b), ref, rtol=1e-3, atol=1e-3)

    # 3) bf16 MXU feed (f32 accumulation + f32 epilogue).  exp() amplifies the
    #    bf16 dot-product rounding, so this path is validated with a looser
    #    tolerance; the strict numerics check is the f32 path above.
    params_bf16 = prepare_npu_params(W_real, W_im, g, block_d=128,
                                     dtype=jnp.bfloat16)
    out_c = jax.block_until_ready(npu_forward(x, params_bf16, block_b=8))
    np.testing.assert_allclose(np.asarray(out_c), ref, rtol=1e-1, atol=1.0)

    print("KERNEL_OK")
</pallas_src>

<mosaic_0001>
module attributes {stable_mosaic.version = 11 : i64} {
  func.func @_npu_kernel_scratch(%arg0: i32, %arg1: i32, %arg2: memref<3x256xf32, #tpu.memory_space<vmem>>, %arg3: memref<8x256xf32, #tpu.memory_space<vmem>>, %arg4: memref<1x256x256xf32, #tpu.memory_space<vmem>>, %arg5: memref<8x128xf32, #tpu.memory_space<vmem>>, %arg6: memref<16x256xf32, #tpu.memory_space<vmem>>) attributes {dimension_semantics = [#tpu.dimension_semantics<parallel>, #tpu.dimension_semantics<arbitrary>], iteration_bounds = array<i64: 3, 2>, scalar_prefetch = 0 : i64, scratch_operands = 1 : i64, tpu.core_type = #tpu.core_type<tc>, window_params = [{pipeline_mode = #tpu.pipeline_mode<synchronous>, transform_indices = @transform_0, window_bounds = array<i64: 3, 256>}, {transform_indices = @transform_1, window_bounds = array<i64: 8, 256>}, {transform_indices = @transform_2, window_bounds = array<i64: 1, 256, 256>}, {transform_indices = @transform_3, window_bounds = array<i64: 8, 128>}]} {
    %c0_i32 = arith.constant 0 : i32
    %0 = arith.cmpi eq, %arg1, %c0_i32 : i32
    %1 = arith.extui %0 : i1 to i32
    %c0_i32_0 = arith.constant 0 : i32
    %2 = arith.cmpi ne, %1, %c0_i32_0 : i32
    scf.if %2 {
      %c0_7 = arith.constant 0 : index
      %c0_8 = arith.constant 0 : index
      %17 = vector.load %arg3[%c0_7, %c0_8] : memref<8x256xf32, #tpu.memory_space<vmem>>, vector<8x256xf32>
      %c0_9 = arith.constant 0 : index
      %c0_10 = arith.constant 0 : index
      %18 = vector.load %arg2[%c0_9, %c0_10] : memref<3x256xf32, #tpu.memory_space<vmem>>, vector<1x256xf32>
      %c1 = arith.constant 1 : index
      %c0_11 = arith.constant 0 : index
      %19 = vector.load %arg2[%c1, %c0_11] : memref<3x256xf32, #tpu.memory_space<vmem>>, vector<1x256xf32>
      %c2 = arith.constant 2 : index
      %c0_12 = arith.constant 0 : index
      %20 = vector.load %arg2[%c2, %c0_12] : memref<3x256xf32, #tpu.memory_space<vmem>>, vector<1x256xf32>
      %21 = math.absf %17 : vector<8x256xf32>
      %cst_13 = arith.constant 1.000000e-16 : f32
      %22 = vector.broadcast %cst_13 : f32 to vector<8x256xf32>
      %23 = arith.addf %21, %22 : vector<8x256xf32>
      %24 = vector.broadcast %18 : vector<1x256xf32> to vector<8x256xf32>
      %25 = arith.mulf %24, %23 : vector<8x256xf32>
      %26 = vector.broadcast %19 : vector<1x256xf32> to vector<8x256xf32>
      %27 = arith.addf %25, %26 : vector<8x256xf32>
      %28 = math.log %27 : vector<8x256xf32>
      %c0_14 = arith.constant 0 : index
      %c0_15 = arith.constant 0 : index
      %29 = vector.load %arg6[%c0_14, %c0_15] : memref<16x256xf32, #tpu.memory_space<vmem>>, vector<8x256xf32>
      tpu.vector_store %arg6[%c0_14, %c0_15], %28 {strides = array<i32>} : memref<16x256xf32, #tpu.memory_space<vmem>>, vector<8x256xf32>,
      %cst_16 = arith.constant 0.000000e+00 : f32
      %30 = vector.broadcast %cst_16 : f32 to vector<8x256xf32>
      %31 = arith.cmpf olt, %17, %30 : vector<8x256xf32>
      %32 = arith.extui %31 : vector<8x256xi1> to vector<8x256xi32>
      %33 = arith.sitofp %32 : vector<8x256xi32> to vector<8x256xf32>
      %34 = vector.broadcast %20 : vector<1x256xf32> to vector<8x256xf32>
      %35 = arith.mulf %34, %33 : vector<8x256xf32>
      %c8 = arith.constant 8 : index
      %c0_17 = arith.constant 0 : index
      %36 = vector.load %arg6[%c8, %c0_17] : memref<16x256xf32, #tpu.memory_space<vmem>>, vector<8x256xf32>
      tpu.vector_store %arg6[%c8, %c0_17], %35 {strides = array<i32>} : memref<16x256xf32, #tpu.memory_space<vmem>>, vector<8x256xf32>,
    } else {
    }
    %c0 = arith.constant 0 : index
    %c0_1 = arith.constant 0 : index
    %3 = vector.load %arg6[%c0, %c0_1] : memref<16x256xf32, #tpu.memory_space<vmem>>, vector<16x256xf32>
    %c0_2 = arith.constant 0 : index
    %c0_3 = arith.constant 0 : index
    %c0_4 = arith.constant 0 : index
    %4 = vector.load %arg4[%c0_2, %c0_3, %c0_4] : memref<1x256x256xf32, #tpu.memory_space<vmem>>, vector<1x256x256xf32>
    %5 = vector.shape_cast %4 : vector<1x256x256xf32> to vector<256x256xf32>
    %cst = arith.constant dense<0.000000e+00> : vector<16x256xf32>
    %6 = tpu.matmul %3, %5, %cst {dimension_numbers = #tpu.dot_dimension_numbers<[1], [0], [0], [1], [0, 0, 1, 1], [], []>} : vector<16x256xf32>, vector<256x256xf32>, vector<16x256xf32> -> vector<16x256xf32>
    %7 = vector.extract_strided_slice %6 {offsets = [0, 0], sizes = [8, 128], strides = [1, 1]} : vector<16x256xf32> to vector<8x128xf32>
    %8 = vector.extract_strided_slice %6 {offsets = [0, 128], sizes = [8, 128], strides = [1, 1]} : vector<16x256xf32> to vector<8x128xf32>
    %9 = vector.extract_strided_slice %6 {offsets = [8, 0], sizes = [8, 128], strides = [1, 1]} : vector<16x256xf32> to vector<8x128xf32>
    %10 = vector.extract_strided_slice %6 {offsets = [8, 128], sizes = [8, 128], strides = [1, 1]} : vector<16x256xf32> to vector<8x128xf32>
    %11 = arith.subf %7, %10 : vector<8x128xf32>
    %12 = math.exp %11 : vector<8x128xf32>
    %13 = arith.addf %8, %9 : vector<8x128xf32>
    %14 = math.cos %13 : vector<8x128xf32>
    %15 = arith.mulf %12, %14 : vector<8x128xf32>
    %c0_5 = arith.constant 0 : index
    %c0_6 = arith.constant 0 : index
    %16 = vector.load %arg5[%c0_5, %c0_6] : memref<8x128xf32, #tpu.memory_space<vmem>>, vector<8x128xf32>
    tpu.vector_store %arg5[%c0_5, %c0_6], %15 {strides = array<i32>} : memref<8x128xf32, #tpu.memory_space<vmem>>, vector<8x128xf32>,
    return
  }
  func.func @transform_0(%arg0: i32, %arg1: i32) -> (i32, i32) {
    %c0_i32 = arith.constant 0 : i32
    %c0_i32_0 = arith.constant 0 : i32
    %c0_i32_1 = arith.constant 0 : i32
    return %c0_i32, %c0_i32_0 : i32, i32
  }
  func.func @transform_1(%arg0: i32, %arg1: i32) -> (i32, i32) {
    %c0_i32 = arith.constant 0 : i32
    %c0_i32_0 = arith.constant 0 : i32
    return %arg0, %c0_i32 : i32, i32
  }
  func.func @transform_2(%arg0: i32, %arg1: i32) -> (i32, i32, i32) {
    %c0_i32 = arith.constant 0 : i32
    %c0_i32_0 = arith.constant 0 : i32
    %c0_i32_1 = arith.constant 0 : i32
    return %arg1, %c0_i32, %c0_i32_0 : i32, i32, i32
  }
  func.func @transform_3(%arg0: i32, %arg1: i32) -> (i32, i32) {
    %c0_i32 = arith.constant 0 : i32
    return %arg0, %arg1 : i32, i32
  }
}

</mosaic_0001>

<bundles_post_ra>
// kernel: tpu_custom_call.1
= control target key start
LH: loop header
LB: loop body
LE: loop exit
PB: predicated region body
PF: predicated region fallthrough
CT: control target
= control target key end

     0   :  { %s1644_s0 = inlined_call_operand.hbm [shape: f32[3,256], index: 0, kind: input, shape index: {}]   ;;  %s1645_s1 = inlined_call_operand.hbm [shape: f32[24,256], index: 1, kind: input, shape index: {}]   ;;  %s1646_s2 = inlined_call_operand.hbm [shape: f32[2,256,256], index: 2, kind: input, shape index: {}]   ;;  %s1647_s3 = inlined_call_operand.hbm [shape: f32[24,256], index: 3, kind: output, shape index: {}]  }
   0x1   :  { %1655 = sst [smem:[#allocation24_spill]] %s1644_s0 }
   0x2   :  { %1656 = sst [smem:[#allocation25_spill]] %s1645_s1 }
   0x3   :  { %8 = vsyncpa [#allocation4], 0 }
   0x4   :  { %9 = vsyncpa [#allocation7], 0 }
   0x5   :  { %11 = vsyncpa [#allocation7 + $0x1], 0 }
   0x6   :  { %12 = vsyncpa [#allocation5], 0 }
   0x7   :  { %14 = vsyncpa [#allocation5 + $0x1], 0  ;;  %s1224_s12 = smov 0   ;;  %s1226_s13 = smov 0  }
   0x8   :  { %s1228_s14 = smov 0   ;;  %s1230_s15 = smov 0  }
   0x9   :  { %s1232_s16 = smov 0   ;;  %s1234_s17 = smov 0  }
   0xa   :  { %s1236_s18 = smov 0   ;;  %s1238_s19 = smov 0  }
   0xb   :  { %s1240_s20 = smov 0   ;;  %s1242_s21 = smov 0  }
   0xc   :  { %s1244_s22 = smov 0   ;;  %s1246_s23 = smov 0  }
   0xd   :  { %s1248_s24 = smov 0   ;;  %s1250_s25 = smov 0  }
   0xe LB: > { %1657 = sst [smem:[#allocation14_spill]] %s1147_s14  ;;  %s29_s26 = sadd.s32 1, %s1183_s23  ;;  %s1191_s25 = sphi %s1250_s25, %s20_s25   ;;  %s1187_s24 = sphi %s1248_s24, %s1689_s24   ;;  %s1183_s23 = sphi %s1246_s23, %s1697_s23   ;;  %s1179_s22 = sphi %s1244_s22, %s1687_s22   ;;  %s1175_s21 = sphi %s1242_s21, %s1696_s21   ;;  %s1171_s20 = sphi %s1240_s20, %s1686_s20   ;;  %s1167_s19 = sphi %s1238_s19, %s1695_s19   ;;  %s1163_s18 = sphi %s1236_s18, %s1694_s18   ;;  %s1159_s17 = sphi %s1234_s17, %s1684_s17   ;;  %s1155_s16 = sphi %s1232_s16, %s1693_s16   ;;  %s1151_s15 = sphi %s1230_s15, %s1692_s15   ;;  %s1147_s14 = sphi %s1228_s14, %s1682_s14   ;;  %s1143_s13 = sphi %s1226_s13, %s1691_s13   ;;  %s1139_s12 = sphi %s1224_s12, %s1690_s12  }
   0xf   : > { %1658 = sst [smem:[#allocation15_spill]] %s1159_s17  ;;  %s32_s27 = sadd.s32 1, %s1187_s24 }
  0x10   : > { %1659 = sst [smem:[#allocation16_spill]] %s1171_s20  ;;  %p30_p0 = scmp.ge.s32.totalorder %s29_s26, 2 }
  0x11   : > { %1660 = sst [smem:[#allocation17_spill]] %s1187_s24  ;;  %s60_s28 = sadd.s32 1, %s1171_s20 }
  0x12   : > { %p67_p1 = scmp.ne.s32.totalorder %s1171_s20, %s1167_s19  ;;  %p68_p2 = scmp.eq.s32.totalorder %s1191_s25, 0 }
  0x13   : > { %s1699_s26 = smov (%p30_p0, %s29_s26), 0  ;;  %s1701_s27 = smov (!%p30_p0, %s32_s27), %s1187_s24 }
  0x14   : > { %1661 = sst [smem:[#allocation18_spill]] %s1699_s26  ;;  %p1305_p3 = por %p68_p2, %p67_p1 }
  0x15   : > { %p73_p4 = scmp.ne.s32.totalorder %s1167_s19, %s1163_s18  ;;  %p34_p5 = scmp.ge.s32.totalorder %s1701_s27, 3 }
  0x16   : > { %s83_s30 = ssub.s32 %s1183_s23, %s1699_s26  ;;  %s86_s4 = sadd.s32 1, %s1159_s17 }
  0x17   : > { %p84_p6 = scmp.eq.s32.totalorder %s83_s30, 0  ;;  %s1703_s27 = smov (%p34_p5, %s1701_s27), 0 }
  0x18   : > { %1663 = sst [smem:[#allocation19_spill]] %s1703_s27  ;;  %s57_s6 = ssub.s32 %s1187_s24, %s1703_s27 }
  0x19   : > { %s1317_s5 = scalar_select %p84_p6, %s1159_s17, %s86_s4  }
  0x1a   : > { %p93_p7 = scmp.ne.s32.totalorder %s1159_s17, %s1155_s16  ;;  %p58_p8 = scmp.eq.s32.totalorder %s57_s6, 0 }
  0x1b   : > { %1664 = sst [smem:[#allocation20_spill]] %s1317_s5  ;;  %s111_s7 = sor.u32 %s83_s30, %s57_s6 }
  0x1c   : > { %p1325_p9 = por %p93_p7, %p68_p2  ;;  %p112_p10 = scmp.eq.s32.totalorder %s111_s7, 0 }
  0x1d   : > { %s1330_s9 = scalar_select %p58_p8, %s1171_s20, %s60_s28  }
  0x1e   : > { %s114_s10 = sadd.s32 1, %s1147_s14  ;;  %p815_p11 = scmp.lt.s32.totalorder %s1191_s25, 6 }
  0x1f   : > { %1666 = sst [smem:[#allocation21_spill]] %s1330_s9  ;;  %s163_s4 = sand.u32 1, %s1191_s25  }
  0x20   : > { %s1334_s11 = scalar_select %p112_p10, %s1147_s14, %s114_s10  }
  0x21   : > { %s165_s27 = sand.u32 1, %s1171_s20   ;;  %s787_s6 = sshll.u32 %s1187_s24, 4 }
  0x22   : > { %1667 = sst [smem:[#allocation22_spill]] %s1334_s11  ;;  %s765_s30 = sshll.u32 %s165_s27, 4 }
  0x23   : > { %s1668_s1 = sld [smem:[#allocation25_spill]]  ;;  %s167_s10 = scalar_lea.vmem [#allocation6], %s765_s30 }
  0x24   : > { %s176_s9 = sshll.u32 %s167_s10, 4  ;;  %p804_p12 = pnand %p815_p11, %p1305_p3  ;;  %s177_s9 = int_to_ptr.vmem [resolvable:$true] %s176_s9 }
  0x25   : > { %p1347_p13 = pnand %p815_p11, %p1325_p9  ;;  %s1351_s26 = scalar_lea.sflag [#allocation7], %s163_s4 }
  0x26   : > { %s1355_s5 = sadd.s32 4294967295, %s1191_s25   ;;  %s761_s30 = sadd.s32 4294967294, %s1191_s25  }
  0x27   : > { %p74_p0 = scmp.eq.s32.totalorder %s1355_s5, 0  ;;  %p99_p1 = scmp.ne.s32.totalorder %s1155_s16, %s1151_s15 }
  0x28   : > { %p124_p2 = scmp.ne.s32.totalorder %s1147_s14, %s1143_s13  ;;  %p125_p3 = scmp.eq.s32.totalorder %s1355_s5, 5 }
  0x29   : > { %s172_s7 = scalar_lea.hbm %s1668_s1, %s787_s6  ;;  %p1369_p5 = por %p74_p0, %p73_p4 }
  0x2a   : > { %s174_s28 = sshll.u32 %s172_s7, 4  ;;  %p1375_p6 = por %p99_p1, %p74_p0  ;;  %s175_s28 = int_to_ptr.hbm [resolvable:$true] %s174_s28 }
  0x2b   : > { %806 = dma.hbm_to_vmem [thread:$0]  (!%p804_p12), %s175_s28, 256, %s177_s9, %s1351_s26  }
  0x2c   : > { %p1379_p7 = por %p125_p3, %p124_p2  ;;  %p130_p8 = scmp.ne.s32.totalorder %s1143_s13, %s1139_s12 }
  0x2d   : > { %p131_p9 = scmp.eq.s32.totalorder %s761_s30, 5  ;;  %p762_p10 = scmp.ge.s32.totalorder %s1191_s25, 1 }
  0x2e   : > { %p138_p11 = scmp.lt.s32.totalorder %s1191_s25, 7  ;;  %s1675_s0 = sld [smem:[#allocation24_spill]] }
  0x2f   : > { %p1387_p12 = por %p131_p9, %p130_p8  ;;  %s185_s28 = sand.u32 1, %s1159_s17  }
  0x30   : > { %p1394_p4 = pnand %p762_p10, %p138_p11  ;;  %s1193_s10 = smov [#allocation3]  }
  0x31   : > { %s1673_s15 = scalar_select %p1387_p12, 1, 0 }
  0x32   : > { %p799_p1 = pneg %p1394_p4  ;;  %s152_s30 = sshll.u32 %s1193_s10, 4  ;;  %s153_s30 = int_to_ptr.vmem [resolvable:$true] %s152_s30 }
  0x33   : > { %1674 = sst [smem:[#allocation23_spill]] %s1673_s15  ;;  %s768_s1 = sshll.u32 %s185_s28, 9 }
  0x34   : > { %s150_s6 = sshll.u32 %s1675_s0, 4  ;;  %p800_p2 = pnand %p799_p1, %p74_p0  ;;  %s151_s6 = int_to_ptr.hbm [resolvable:$true] %s150_s6 }
  0x35   : > { %s788_s24 = sshll.u32 %s1183_s23, 9  ;;  %s187_s18 = scalar_lea.vmem [#allocation8], %s768_s1 }
  0x36   : > { %s195_s4 = sshll.u32 %s187_s18, 4  ;;  %s192_s11 = scalar_lea.hbm %s1646_s2, %s788_s24  ;;  %s196_s4 = int_to_ptr.vmem [resolvable:$true] %s195_s4 }
  0x37   : > { %802 = dma.hbm_to_vmem [thread:$0]  (!%p800_p2), %s151_s6, 128, %s153_s30, [#allocation4]  }
  0x38   : > { %s193_s14 = sshll.u32 %s192_s11, 4  ;;  %s1194_s17 = smov 256   ;;  %s194_s14 = int_to_ptr.hbm [resolvable:$true] %s193_s14 }
  0x39   : > { %s1195_s15 = smov 16   ;;  %207 = sbr.rel (%p1394_p4) target bundleno = 370 (0x172), region = 32 }
  0x3a   : > { %809 = dma.hbm_to_vmem [thread:$0]  (!%p1347_p13), %s194_s14, 8192, %s196_s4, %s1351_s26, %s1194_s17, %s1194_s17, %s1195_s15  }
  0x3e   : > { %1122 = dma.done.wait (%p74_p0), [#allocation4], 128  }
  0x3f   : > { %1124 = vsyncadd (%p74_p0), [#allocation4], 4294967168  ;;  %s214_s0 = sand.u32 1, %s1355_s5   ;;  %s216_s1 = sand.u32 1, %s1167_s19  }
  0x40   : > { %s773_s20 = sshll.u32 %s216_s1, 4  ;;  %s215_s24 = scalar_lea.sflag [#allocation7], %s214_s0 }
  0x41   : > { %s218_s11 = scalar_lea.vmem [#allocation6], %s773_s20 }
  0x42   : > { %1126 = dma.done.wait (%p1369_p5), %s215_s24, 256  }
  0x43   : > { %1128 = vsyncadd (%p1369_p5), %s215_s24, 4294967040  ;;  %s226_s14 = sand.u32 1, %s1155_s16  }
  0x44   : > { %s774_s17 = sshll.u32 %s226_s14, 9 }
  0x45   : > { %s1423_s27 = scalar_lea.vmem [#allocation8], %s774_s17 }
  0x46   : > { %1130 = dma.done.wait (%p1375_p6), %s215_s24, 8192  }
  0x47   : > { %1132 = vsyncadd (%p1375_p6), %s215_s24, 4294959104  ;;  %s254_s26 = sand.u32 1, %s1143_s13   ;;  %p776_p13 = scmp.ne.s32.totalorder %s1175_s21, 0 }
  0x48   : > { %s1432_s5 = sshll.u32 %s254_s26, 3 }
  0x49   : > { %s256_s29 = scalar_lea.vmem [#allocation9], %s1432_s5  ;;  %260 = sbr.rel (%p776_p13) target bundleno = 98 (0x62), region = 48 }
  0x4e   : > { %v261_v0 = vld [vmem:[%s218_s11] sm:$0xff]  ;;  %v263_v1 = vld [vmem:[#allocation3] ss:$4 sm:$0x3]  ;;  %v1196_v13 = vmov 0.0  }
  0x4f   : > { %v262_v2 = vld [vmem:[%s218_s11 + $0x8] sm:$0xff]  ;;  %v268_v4 = vand.u32 2147483647, %v261_v0  ;;  %v273_v5 = vperm.slane %v263_v1, 0  ;;  %v274_v8 = vperm.slane %v263_v1, 1  ;;  %vm292_vm0 = vcmp.lt.f32.partialorder %v261_v0, 0.0 }
  0x50   : > { %v265_v3 = vld [vmem:[#allocation3 + $0x1] ss:$4 sm:$0x3]  ;;  %v269_v7 = vand.u32 2147483647, %v262_v2  ;;  %v777_v14 = vsel %vm292_vm0, 1.0, %v1196_v13 }
  0x51   : > { %v280_v6 = vperm.slane %v265_v3, 0  ;;  %v281_v9 = vperm.slane %v265_v3, 1  ;;  %v270_v10 = vadd.f32 1e-16, %v268_v4  ;;  %vm293_vm1 = vcmp.lt.f32.partialorder %v262_v2, 0.0 }
  0x52   : > { %v267_v11 = vld [vmem:[#allocation3 + $0x2] ss:$4 sm:$0x3]  ;;  %v271_v12 = vadd.f32 1e-16, %v269_v7  ;;  %v778_v17 = vsel %vm293_vm1, 1.0, %v1196_v13 }
  0x53   : > { %v299_v15 = vperm.slane %v267_v11, 0  ;;  %v277_v16 = vmul.f32 %v273_v5, %v270_v10  ;;  %v300_v18 = vperm.slane %v267_v11, 1 }
  0x54   : > { %v278_v19 = vmul.f32 %v274_v8, %v271_v12 }
  0x55   : > { %v303_v20 = vmul.f32 %v777_v14, %v299_v15  ;;  %v284_v21 = vadd.f32 %v280_v6, %v277_v16  ;;  %v304_v22 = vmul.f32 %v778_v17, %v300_v18 }
  0x56   : > { %v285_v23 = vadd.f32 %v281_v9, %v278_v19 }
  0x57   : > { %305 = vst [vmem:[#allocation2 + $0x18] sm:$0xff] %v303_v20  ;;  %941 = vlog2.f32 %v284_v21 }
  0x58   : > { %306 = vst [vmem:[#allocation2 + $0x8] sm:$0xff] %v304_v22  ;;  %943 = vlog2.f32 %v285_v23 }
  0x5d   : > { %v942_v24 = vpop.eup %941 }
  0x5e   : > { %v944_v25 = vpop.eup %943  ;;  %v287_v26 = vmul.f32 0.6931472, %v942_v24 }
  0x5f   : > { %v289_v27 = vmul.f32 0.6931472, %v944_v25 }
  0x60   : > { %290 = vst [vmem:[#allocation2 + $0x10] sm:$0xff] %v287_v26 }
  0x61   : > { %291 = vst [vmem:[#allocation2] sm:$0xff] %v289_v27 }
  0x62 PF: > { %v341_v28 = vld [vmem:[%s1423_s27 + $0xf0] sm:$0xff]  ;;  %v342_v30 = vld [vmem:[%s1423_s27 + $0xf8] sm:$0xff]  ;;  %v339_v32 = vld [vmem:[%s1423_s27 + $0xe0] sm:$0xff]  ;;  %s783_s8 = sshll.u32 %s1179_s22, 1  ;;  %s628_s30 = scalar_lea.sflag [#allocation5], %s254_s26 }
  0x63   : > { %v373_v29 = vld [vmem:[%s1423_s27 + $0x1f0] sm:$0xff]  ;;  %375 = vmatpush.msra.mxu0 %v341_v28  ;;  %v374_v31 = vld [vmem:[%s1423_s27 + $0x1f8] sm:$0xff]  ;;  %v371_v33 = vld [vmem:[%s1423_s27 + $0x1e0] sm:$0xff]  ;;  %421 = vmatpush.msra.mxu2 %v342_v30  ;;  %s638_s15 = sadd.s32 %s1175_s21, %s783_s8  ;;  %s642_s21 = sshll.u32 %s256_s29, 4  ;;  %s643_s21 = int_to_ptr.vmem [resolvable:$true] %s642_s21 }
  0x64   : > { %398 = vmatpush.msra.mxu1 %v373_v29  ;;  %444 = vmatpush.msra.mxu3 %v374_v31  ;;  %v340_v34 = vld [vmem:[%s1423_s27 + $0xe8] sm:$0xff]  ;;  %v337_v36 = vld [vmem:[%s1423_s27 + $0xd0] sm:$0xff]  ;;  %v338_v38 = vld [vmem:[%s1423_s27 + $0xd8] sm:$0xff]  ;;  %s784_s6 = sshll.u32 %s638_s15, 3  ;;  %s1057_s20 = scalar_lea.hbm %s1647_s3, 48 }
  0x65   : > { %v372_v35 = vld [vmem:[%s1423_s27 + $0x1e8] sm:$0xff]  ;;  %376 = vmatpush.msra.mxu0 %v339_v32  ;;  %v369_v37 = vld [vmem:[%s1423_s27 + $0x1d0] sm:$0xff]  ;;  %v370_v39 = vld [vmem:[%s1423_s27 + $0x1d8] sm:$0xff]  ;;  %422 = vmatpush.msra.mxu2 %v340_v34  ;;  %s640_s28 = scalar_lea.hbm %s1647_s3, %s784_s6 }
  0x66   : > { %399 = vmatpush.msra.mxu1 %v371_v33  ;;  %445 = vmatpush.msra.mxu3 %v372_v35  ;;  %v335_v40 = vld [vmem:[%s1423_s27 + $0xc0] sm:$0xff]  ;;  %v336_v42 = vld [vmem:[%s1423_s27 + $0xc8] sm:$0xff]  ;;  %v333_v44 = vld [vmem:[%s1423_s27 + $0xb0] sm:$0xff]  ;;  %s644_s10 = sshll.u32 %s640_s28, 4  ;;  %s645_s10 = int_to_ptr.hbm [resolvable:$true] %s644_s10 }
  0x67   : > { %v367_v41 = vld [vmem:[%s1423_s27 + $0x1c0] sm:$0xff]  ;;  %377 = vmatpush.msra.mxu0 %v337_v36  ;;  %v368_v43 = vld [vmem:[%s1423_s27 + $0x1c8] sm:$0xff]  ;;  %423 = vmatpush.msra.mxu2 %v338_v38  ;;  %v365_v45 = vld [vmem:[%s1423_s27 + $0x1b0] sm:$0xff]  ;;  %s1051_s18 = sshra.s32 %s645_s10, 4  ;;  %s1052_s18 = int_to_ptr.hbm [resolvable:$true] %s1051_s18 }
  0x68   : > { %400 = vmatpush.msra.mxu1 %v369_v37  ;;  %446 = vmatpush.msra.mxu3 %v370_v39  ;;  %v334_v46 = vld [vmem:[%s1423_s27 + $0xb8] sm:$0xff]  ;;  %v331_v48 = vld [vmem:[%s1423_s27 + $0xa0] sm:$0xff]  ;;  %v332_v50 = vld [vmem:[%s1423_s27 + $0xa8] sm:$0xff]  ;;  %s1053_s4 = scalar_lea.hbm %s1052_s18, 8  ;;  %p1058_p6 = scmp.lt.s32.totalorder %s1052_s18, %s1647_s3 }
  0x69   : > { %378 = vmatpush.msra.mxu0 %v335_v40  ;;  %v366_v47 = vld [vmem:[%s1423_s27 + $0x1b8] sm:$0xff]  ;;  %424 = vmatpush.msra.mxu2 %v336_v42  ;;  %v363_v49 = vld [vmem:[%s1423_s27 + $0x1a0] sm:$0xff]  ;;  %v364_v51 = vld [vmem:[%s1423_s27 + $0x1a8] sm:$0xff]  ;;  %p1054_p0 = scmp.ne.s32.totalorder %s1052_s18, %s1053_s4  ;;  %p1059_p8 = scmp.lt.s32.totalorder %s1057_s20, %s1053_s4 }
  0x6a   : > { %401 = vmatpush.msra.mxu1 %v367_v41  ;;  %447 = vmatpush.msra.mxu3 %v368_v43  ;;  %v329_v52 = vld [vmem:[%s1423_s27 + $0x90] sm:$0xff]  ;;  %v330_v54 = vld [vmem:[%s1423_s27 + $0x98] sm:$0xff]  ;;  %v327_v56 = vld [vmem:[%s1423_s27 + $0x80] sm:$0xff] }
  0x6b   : > { %379 = vmatpush.msra.mxu0 %v333_v44  ;;  %425 = vmatpush.msra.mxu2 %v334_v46  ;;  %v361_v53 = vld [vmem:[%s1423_s27 + $0x190] sm:$0xff]  ;;  %v362_v55 = vld [vmem:[%s1423_s27 + $0x198] sm:$0xff]  ;;  %v359_v57 = vld [vmem:[%s1423_s27 + $0x180] sm:$0xff]  ;;  %p1055_p3 = pnand %p1054_p0, %p1379_p7  ;;  %p1060_p9 = por %p1059_p8, %p1058_p6 }
  0x6c   : > { %402 = vmatpush.msra.mxu1 %v365_v45  ;;  %448 = vmatpush.msra.mxu3 %v366_v47  ;;  %v328_v58 = vld [vmem:[%s1423_s27 + $0x88] sm:$0xff]  ;;  %v325_v60 = vld [vmem:[%s1423_s27 + $0x70] sm:$0xff]  ;;  %v326_v62 = vld [vmem:[%s1423_s27 + $0x78] sm:$0xff] }
  0x6d   : > { %380 = vmatpush.msra.mxu0 %v331_v48  ;;  %426 = vmatpush.msra.mxu2 %v332_v50  ;;  %v360_v59 = vld [vmem:[%s1423_s27 + $0x188] sm:$0xff]  ;;  %v357_v61 = vld [vmem:[%s1423_s27 + $0x170] sm:$0xff]  ;;  %v358_v63 = vld [vmem:[%s1423_s27 + $0x178] sm:$0xff]  ;;  %p1056_p5 = pneg %p1055_p3 }
  0x6e   : > { %403 = vmatpush.msra.mxu1 %v363_v49  ;;  %449 = vmatpush.msra.mxu3 %v364_v51  ;;  %v323_v0 = vld [vmem:[%s1423_s27 + $0x60] sm:$0xff]  ;;  %v324_v2 = vld [vmem:[%s1423_s27 + $0x68] sm:$0xff]  ;;  %v321_v4 = vld [vmem:[%s1423_s27 + $0x50] sm:$0xff] }
  0x6f   : > { %381 = vmatpush.msra.mxu0 %v329_v52  ;;  %427 = vmatpush.msra.mxu2 %v330_v54  ;;  %v355_v1 = vld [vmem:[%s1423_s27 + $0x160] sm:$0xff]  ;;  %v356_v3 = vld [vmem:[%s1423_s27 + $0x168] sm:$0xff]  ;;  %v353_v5 = vld [vmem:[%s1423_s27 + $0x150] sm:$0xff]  ;;  %p1061_p10 = pnand %p1060_p9, %p1056_p5 }
  0x70   : > { %404 = vmatpush.msra.mxu1 %v361_v53  ;;  %450 = vmatpush.msra.mxu3 %v362_v55  ;;  %v322_v6 = vld [vmem:[%s1423_s27 + $0x58] sm:$0xff]  ;;  %v319_v8 = vld [vmem:[%s1423_s27 + $0x40] sm:$0xff]  ;;  %v320_v10 = vld [vmem:[%s1423_s27 + $0x48] sm:$0xff]  ;;  %v1197_v53 = vmov 683565275  }
  0x71   : > { %382 = vmatpush.msra.mxu0 %v327_v56  ;;  %428 = vmatpush.msra.mxu2 %v328_v58  ;;  %v354_v7 = vld [vmem:[%s1423_s27 + $0x158] sm:$0xff]  ;;  %v351_v9 = vld [vmem:[%s1423_s27 + $0x140] sm:$0xff]  ;;  %v352_v11 = vld [vmem:[%s1423_s27 + $0x148] sm:$0xff]  ;;  %v1198_v55 = vmov 2475754826  }
  0x72   : > { %405 = vmatpush.msra.mxu1 %v359_v57  ;;  %451 = vmatpush.msra.mxu3 %v360_v59  ;;  %v317_v12 = vld [vmem:[%s1423_s27 + $0x30] sm:$0xff]  ;;  %v318_v14 = vld [vmem:[%s1423_s27 + $0x38] sm:$0xff]  ;;  %v315_v16 = vld [vmem:[%s1423_s27 + $0x20] sm:$0xff]  ;;  %v1199_v58 = vmov 2131351028  }
  0x73   : > { %383 = vmatpush.msra.mxu0 %v325_v60  ;;  %429 = vmatpush.msra.mxu2 %v326_v62  ;;  %v349_v13 = vld [vmem:[%s1423_s27 + $0x130] sm:$0xff]  ;;  %v350_v15 = vld [vmem:[%s1423_s27 + $0x138] sm:$0xff]  ;;  %v347_v17 = vld [vmem:[%s1423_s27 + $0x120] sm:$0xff] }
  0x74   : > { %406 = vmatpush.msra.mxu1 %v357_v61  ;;  %452 = vmatpush.msra.mxu3 %v358_v63  ;;  %v316_v18 = vld [vmem:[%s1423_s27 + $0x28] sm:$0xff]  ;;  %v313_v20 = vld [vmem:[%s1423_s27 + $0x10] sm:$0xff]  ;;  %v314_v22 = vld [vmem:[%s1423_s27 + $0x18] sm:$0xff]  ;;  %v1200_v61 = vmov 2102212464  }
  0x75   : > { %384 = vmatpush.msra.mxu0 %v323_v0  ;;  %430 = vmatpush.msra.mxu2 %v324_v2  ;;  %v348_v19 = vld [vmem:[%s1423_s27 + $0x128] sm:$0xff]  ;;  %v345_v21 = vld [vmem:[%s1423_s27 + $0x110] sm:$0xff]  ;;  %v346_v23 = vld [vmem:[%s1423_s27 + $0x118] sm:$0xff]  ;;  %v1201_v0 = vmov 920167782  }
  0x76   : > { %407 = vmatpush.msra.mxu1 %v355_v1  ;;  %453 = vmatpush.msra.mxu3 %v356_v3  ;;  %v311_v24 = vld [vmem:[%s1423_s27] sm:$0xff]  ;;  %v312_v26 = vld [vmem:[%s1423_s27 + $0x8] sm:$0xff]  ;;  %v308_v29 = vld [vmem:[#allocation2] sm:$0xff]  ;;  %v1202_v3 = vmov 1326507024  }
  0x77   : > { %385 = vmatpush.msra.mxu0 %v321_v4  ;;  %431 = vmatpush.msra.mxu2 %v322_v6  ;;  %v343_v25 = vld [vmem:[%s1423_s27 + $0x100] sm:$0xff]  ;;  %v344_v27 = vld [vmem:[%s1423_s27 + $0x108] sm:$0xff]  ;;  %v309_v30 = vld [vmem:[#allocation2 + $0x18] sm:$0xff] }
  0x78   : > { %408 = vmatpush.msra.mxu1 %v353_v5  ;;  %454 = vmatpush.msra.mxu3 %v354_v7  ;;  %v307_v28 = vld [vmem:[#allocation2 + $0x10] sm:$0xff]  ;;  %v310_v31 = vld [vmem:[#allocation2 + $0x8] sm:$0xff] }
  0x79   : > { %386 = vmatpush.msra.mxu0 %v319_v8  ;;  %432 = vmatpush.msra.mxu2 %v320_v10 }
  0x7a   : > { %409 = vmatpush.msra.mxu1 %v351_v9  ;;  %455 = vmatpush.msra.mxu3 %v352_v11 }
  0x7b   : > { %387 = vmatpush.msra.mxu0 %v317_v12  ;;  %433 = vmatpush.msra.mxu2 %v318_v14 }
  0x7c   : > { %410 = vmatpush.msra.mxu1 %v349_v13  ;;  %456 = vmatpush.msra.mxu3 %v350_v15 }
  0x7d   : > { %388 = vmatpush.msra.mxu0 %v315_v16  ;;  %434 = vmatpush.msra.mxu2 %v316_v18 }
  0x7e   : > { %411 = vmatpush.msra.mxu1 %v347_v17  ;;  %457 = vmatpush.msra.mxu3 %v348_v19 }
  0x7f   : > { %389 = vmatpush.msra.mxu0 %v313_v20  ;;  %435 = vmatpush.msra.mxu2 %v314_v22 }
  0x80   : > { %412 = vmatpush.msra.mxu1 %v345_v21  ;;  %458 = vmatpush.msra.mxu3 %v346_v23 }
  0x81   : > { %390 = vmatpush.msra.mxu0 %v311_v24  ;;  %436 = vmatpush.msra.mxu2 %v312_v26 }
  0x82   : > { %413 = vmatpush.msra.mxu1 %v343_v25  ;;  %459 = vmatpush.msra.mxu3 %v344_v27 }
  0x83   : > { %391 = vmatmul.f32.vlgmr.msra.gmra.mxu0 %v307_v28  ;;  %414 = vmatmul.f32.vlgmr.msra.gmra.mxu1 %v308_v29 }
  0x84   : > { %437 = vmatmul.f32.vlgmr.msra.gmra.mxu2 %v307_v28  ;;  %460 = vmatmul.f32.vlgmr.msra.gmra.mxu3 %v308_v29 }
  0x8b   : > { %394 = vmatmul.f32.gmra.mxu0 %v309_v30  ;;  %417 = vmatmul.f32.gmra.mxu1 %v310_v31 }
  0x8c   : > { %440 = vmatmul.f32.gmra.mxu2 %v309_v30  ;;  %463 = vmatmul.f32.gmra.mxu3 %v310_v31 }
 0x100   : > { %v392_v32 = vpop.f32.mrf.mxu0  ;;  %v415_v33 = vpop.f32.mrf.mxu1 }
 0x101   : > { %v1500_v34 = vadd.f32 %v415_v33, %v392_v32 }
 0x107   : > { %v438_v35 = vpop.f32.mrf.mxu2  ;;  %v461_v36 = vpop.f32.mrf.mxu3 }
 0x108   : > { %v462_v37 = vadd.f32 %v461_v36, %v438_v35  ;;  %v395_v38 = vpop.f32.mrf.mxu0  ;;  %v418_v39 = vpop.f32.mrf.mxu1 }
 0x109   : > { %v419_v40 = vadd.f32 %v418_v39, %v395_v38 }
 0x10b   : > { %v1502_v41 = vadd.f32 %v462_v37, %v419_v40 }
 0x10d   : > { %v474_v42 = vand.u32 2139095040, %v1502_v41  ;;  %v471_v45 = vand.u32 2147483647, %v1502_v41  ;;  %vm473_vm14 = vcmp.lt.s32.totalorder %v1502_v41, 0 }
 0x10f   : > { %v475_v43 = vshrl.u32 %v474_v42, 23  ;;  %v478_v47 = vand.u32 8388607, %v471_v45  ;;  %v1203_v42 = vmov 0   ;;  %vm1556_vm15 = vcmp.le.f32.partialorder %v471_v45, 0.7853982 }
 0x111   : > { %v779_v44 = vadd.s32 4294967169, %v475_v43  ;;  %v479_v51 = vor.u32 8388608, %v478_v47 }
 0x113   : > { %v481_v46 = vadd.s32 1, %v779_v44  ;;  %v1519_v10 = vshll.u32 %v479_v51, 8 }
 0x115   : > { %vm482_vm2 = vcmp.gt.s32.totalorder %v481_v46, 0  ;;  %v520_v19 = vand.u32 65535, %v1519_v10  ;;  %v521_v24 = vshrl.u32 %v1519_v10, 16 }
 0x116   : > { %v483_v48 = vsel %vm482_vm2, %v481_v46, 0 }
 0x117   : > { %v485_v49 = vand.u32 31, %v483_v48  ;;  %v1510_v52 = vshrl.u32 %v483_v48, 5 }
 0x119   : > { %v1508_v50 = vsub.s32 32, %v485_v49  ;;  %v488_v54 = vshll.u32 %v1197_v53, %v485_v49  ;;  %v491_v56 = vshll.u32 %v1198_v55, %v485_v49  ;;  %v494_v60 = vshll.u32 %v1199_v58, %v485_v49 }
 0x11a   : > { %v497_v63 = vshll.u32 %v1200_v61, %v485_v49  ;;  %v500_v2 = vshll.u32 %v1201_v0, %v485_v49  ;;  %vm503_vm3 = vcmp.lt.s32.totalorder %v1510_v52, 1  ;;  %vm506_vm4 = vcmp.lt.s32.totalorder %v1510_v52, 4 }
 0x11b   : > { %v489_v57 = vshrl.u32 %v1198_v55, %v1508_v50  ;;  %v492_v59 = vshrl.u32 %v1199_v58, %v1508_v50  ;;  %v495_v62 = vshrl.u32 %v1200_v61, %v1508_v50  ;;  %v498_v1 = vshrl.u32 %v1201_v0, %v1508_v50 }
 0x11c   : > { %v501_v4 = vshrl.u32 %v1202_v3, %v1508_v50  ;;  %vm505_vm5 = vcmp.lt.s32.totalorder %v1510_v52, 3  ;;  %vm504_vm6 = vcmp.lt.s32.totalorder %v1510_v52, 2  ;;  %v487_v48 = vshrl.u32 %v1197_v53, %v1508_v50 }
 0x11d   : > { %v490_v5 = vor.u32 %v489_v57, %v488_v54  ;;  %v493_v6 = vor.u32 %v492_v59, %v491_v56  ;;  %v496_v7 = vor.u32 %v495_v62, %v494_v60  ;;  %v499_v8 = vor.u32 %v498_v1, %v497_v63 }
 0x11e   : > { %v502_v9 = vor.u32 %v501_v4, %v500_v2 }
 0x11f   : > { %v511_v11 = vsel %vm503_vm3, %v490_v5, %v493_v6  ;;  %v515_v12 = vsel %vm503_vm3, %v493_v6, %v496_v7  ;;  %v512_v13 = vsel %vm506_vm4, %v499_v8, 920167782  ;;  %v508_v40 = vsel %vm506_vm4, %v496_v7, 2102212464 }
 0x120   : > { %v516_v14 = vsel %vm506_vm4, %v502_v9, 1326507024  ;;  %v513_v15 = vsel %vm505_vm5, %v496_v7, %v512_v13  ;;  %v507_v58 = vsel %vm503_vm3, %v487_v48, %v490_v5  ;;  %v509_v59 = vsel %vm505_vm5, %v493_v6, %v508_v40 }
 0x121   : > { %v517_v16 = vsel %vm505_vm5, %v499_v8, %v516_v14  ;;  %v514_v17 = vsel %vm504_vm6, %v511_v11, %v513_v15  ;;  %v510_v0 = vsel %vm504_vm6, %v507_v58, %v509_v59  ;;  %vm614_vm3 = vweird.f32 %v1502_v41 }
 0x122   : > { %v518_v18 = vsel %vm504_vm6, %v515_v12, %v517_v16  ;;  %v544_v22 = vand.u32 65535, %v514_v17  ;;  %v545_v23 = vshrl.u32 %v514_v17, 16  ;;  %v564_v3 = vmul.u32 %v1519_v10, %v510_v0 }
 0x123   : > { %v522_v20 = vand.u32 65535, %v518_v18  ;;  %v523_v21 = vshrl.u32 %v518_v18, 16 }
 0x124   : > { %v547_v26 = vmul.u32 %v545_v23, %v520_v19  ;;  %v548_v28 = vmul.u32 %v544_v22, %v521_v24  ;;  %v546_v31 = vmul.u32 %v544_v22, %v520_v19  ;;  %v549_v35 = vmul.u32 %v545_v23, %v521_v24 }
 0x125   : > { %v525_v25 = vmul.u32 %v523_v21, %v520_v19  ;;  %v526_v27 = vmul.u32 %v522_v20, %v521_v24  ;;  %v524_v29 = vmul.u32 %v522_v20, %v520_v19  ;;  %v527_v33 = vmul.u32 %v523_v21, %v521_v24 }
 0x126   : > { %v550_v32 = vshll.u32 %v547_v26, 16  ;;  %v552_v37 = vshll.u32 %v548_v28, 16  ;;  %v551_v56 = vshrl.u32 %v547_v26, 16  ;;  %v553_v62 = vshrl.u32 %v548_v28, 16 }
 0x127   : > { %v528_v30 = vshll.u32 %v525_v25, 16  ;;  %v530_v36 = vshll.u32 %v526_v27, 16  ;;  %v529_v54 = vshrl.u32 %v525_v25, 16  ;;  %v531_v60 = vshrl.u32 %v526_v27, 16 }
 0x128   : > { %vm554_vm8 = vc.u32 %v546_v31, %v550_v32  ;;  %v556_v39 = vadd.s32 %v550_v32, %v546_v31 }
 0x129   : > { %vm532_vm7 = vc.u32 %v524_v29, %v528_v30  ;;  %v534_v38 = vadd.s32 %v528_v30, %v524_v29  ;;  %v555_v44 = vsel %vm554_vm8, 1, %v1203_v42  ;;  %v441_v29 = vpop.f32.mrf.mxu2  ;;  %v464_v30 = vpop.f32.mrf.mxu3 }
 0x12a   : > { %v533_v43 = vsel %vm532_vm7, 1, %v1203_v42  ;;  %v557_v47 = vadd.s32 %v555_v44, %v549_v35  ;;  %vm558_vm10 = vc.u32 %v556_v39, %v552_v37  ;;  %v560_v53 = vadd.s32 %v556_v39, %v552_v37 }
 0x12b   : > { %v535_v46 = vadd.s32 %v533_v43, %v527_v33  ;;  %vm536_vm9 = vc.u32 %v534_v38, %v530_v36  ;;  %v559_v51 = vsel %vm558_vm10, 1, %v1203_v42  ;;  %v465_v33 = vadd.f32 %v464_v30, %v441_v29 }
 0x12c   : > { %v537_v49 = vsel %vm536_vm9, 1, %v1203_v42  ;;  %v561_v57 = vadd.s32 %v559_v51, %v557_v47 }
 0x12d   : > { %v539_v55 = vadd.s32 %v537_v49, %v535_v46  ;;  %v467_v39 = vsub.f32 %v1500_v34, %v465_v33 }
 0x12e   : > { %v562_v63 = vadd.s32 %v561_v57, %v551_v56 }
 0x12f   : > { %v540_v61 = vadd.s32 %v539_v55, %v529_v54  ;;  %v468_v47 = vmul.f32 1.442695, %v467_v39 }
 0x130   : > { %v563_v1 = vadd.s32 %v562_v63, %v553_v62 }
 0x131   : > { %v541_v50 = vadd.s32 %v540_v61, %v531_v60  ;;  %945 = vpow2.f32 %v468_v47 }
 0x132   : > { %v567_v2 = vadd.s32 1, %v563_v1 }
 0x133   : > { %vm566_vm11 = vc.u32 %v541_v50, %v560_v53  ;;  %v565_v15 = vadd.s32 %v560_v53, %v541_v50 }
 0x134   : > { %v568_v4 = vsel %vm566_vm11, %v567_v2, %v563_v1 }
 0x135   : > { %v569_v7 = vadd.s32 %v568_v4, %v564_v3 }
 0x137   : > { %v570_v5 = vadd.s32 536870912, %v569_v7  ;;  %v946_v62 = vpop.eup %945 }
 0x139   : > { %v571_v8 = vshrl.u32 %v570_v5, 30 }
 0x13b   : > { %v572_v9 = vshll.u32 %v571_v8, 30  ;;  %v595_v37 = vsub.s32 4, %v571_v8 }
 0x13d   : > { %v573_v6 = vsub.s32 %v569_v7, %v572_v9  ;;  %v596_v43 = vsel %vm473_vm14, %v595_v37, %v571_v8 }
 0x13e   : > { %v598_v48 = vsel %vm1556_vm15, 0, %v596_v43 }
 0x13f   : > { %vm574_vm12 = vcmp.lt.s32.totalorder %v573_v6, 0  ;;  %v575_v11 = vsub.s32 0, %v573_v6  ;;  %v615_v34 = vand.u32 3, %v598_v48 }
 0x141   : > { %v576_v12 = vsel %vm574_vm12, %v575_v11, %v573_v6  ;;  %vm617_vm0 = vcmp.eq.s32.totalorder %v615_v34, 0  ;;  %vm620_vm1 = vcmp.eq.s32.totalorder %v615_v34, 2  ;;  %vm616_vm2 = vcmp.lt.s32.totalorder %v615_v34, 2 }
 0x142   : > { %v577_v13 = vclz %v576_v12 }
 0x144   : > { %v780_v14 = vadd.s32 4294967294, %v577_v13 }
 0x146   : > { %vm781_vm13 = vcmp.lt.s32.totalorder %v780_v14, 0 }
 0x147   : > { %v580_v52 = vsel %vm781_vm13, 0, %v780_v14 }
 0x148   : > { %v581_v16 = vsub.s32 32, %v580_v52  ;;  %v585_v17 = vsub.s32 4294967266, %v580_v52  ;;  %v582_v18 = vshll.u32 %v573_v6, %v580_v52 }
 0x14a   : > { %v583_v19 = vshrl.u32 %v565_v15, %v581_v16  ;;  %v586_v20 = vadd.s32 127, %v585_v17 }
 0x14c   : > { %v584_v10 = vor.u32 %v583_v19, %v582_v18  ;;  %v587_v21 = vshll.u32 %v586_v20, 23 }
 0x14e   : > { %v588_v22 = vor.u32 4788187, %v587_v21  ;;  %v591_v24 = vcvt.s32.f32 %v584_v10 }
 0x150   : > { %v589_v23 = vand.u32 2147483647, %v588_v22 }
 0x152   : > { %v592_v25 = vmul.f32 %v591_v24, %v589_v23 }
 0x154   : > { %v593_v26 = vxor.u32 2147483648, %v592_v25 }
 0x156   : > { %v594_v28 = vsel %vm473_vm14, %v593_v26, %v592_v25 }
 0x157   : > { %v597_v31 = vsel %vm1556_vm15, %v1502_v41, %v594_v28 }
 0x158   : > { %v599_v32 = vmul.f32 %v597_v31, %v597_v31 }
 0x15a   : > { %v600_v35 = vmul.f32 -0.001358992, %v599_v32  ;;  %v607_v36 = vmul.f32 -0.00019511016, %v599_v32 }
 0x15c   : > { %v601_v38 = vadd.f32 0.041655596, %v600_v35  ;;  %v608_v45 = vadd.f32 0.008332121, %v607_v36 }
 0x15e   : > { %v602_v40 = vmul.f32 %v601_v38, %v599_v32  ;;  %v609_v42 = vmul.f32 %v608_v45, %v599_v32 }
 0x160   : > { %v603_v44 = vadd.f32 -0.4999988, %v602_v40  ;;  %v610_v46 = vadd.f32 -0.16666654, %v609_v42 }
 0x162   : > { %v604_v49 = vmul.f32 %v603_v44, %v599_v32  ;;  %v611_v51 = vmul.f32 %v610_v46, %v599_v32 }
 0x164   : > { %v605_v54 = vadd.f32 1.0, %v604_v49  ;;  %v612_v55 = vadd.f32 1.0, %v611_v51 }
 0x166   : > { %v613_v56 = vmul.f32 %v612_v55, %v597_v31  ;;  %v621_v57 = vxor.u32 2147483648, %v605_v54 }
 0x168   : > { %v618_v58 = vxor.u32 2147483648, %v613_v56  ;;  %v622_v60 = vsel %vm620_vm1, %v621_v57, %v613_v56 }
 0x16a   : > { %v619_v59 = vsel %vm617_vm0, %v605_v54, %v618_v58 }
 0x16b   : > { %v623_v61 = vsel %vm616_vm2, %v619_v59, %v622_v60 }
 0x16c   : > { %v624_v63 = vsel %vm614_vm3, nan, %v623_v61 }
 0x16d   : > { %v625_v0 = vmul.f32 %v946_v62, %v624_v63 }
 0x16f   : > { %626 = vst [vmem:[%s256_s29] sm:$0xff] %v625_v0 }
 0x170   : > { %1064 = shalt.err (!%p1061_p10)
}
 0x171   : > { %797 = dma.vmem_to_hbm [thread:$0]  (%p1379_p7), %s643_s21, 128, %s645_s10, %s628_s30  }
 0x172 PF: > { %p817_p11 = scmp.ge.s32.totalorder %s1191_s25, 2  ;;  %s656_s17 = sand.u32 1, %s1139_s12  }
 0x173   : > { %s657_s27 = scalar_lea.sflag [#allocation5], %s656_s17 }
 0x174   : > { %p811_p4 = pnand %p817_p11, %p1387_p12 }
 0x176   : > { %p812_p1 = pneg %p811_p4 }
 0x178   : > { %1134 = dma.done.wait (%p812_p1), %s657_s27, 128  }
 0x179   : > { %1136 = vsyncadd (%p812_p1), %s657_s27, 4294967168  ;;  %s20_s25 = sadd.s32 1, %s1191_s25   ;;  %s1681_s9 = sld [smem:[#allocation14_spill]] }
 0x17a   : > { %p1597_p2 = scmp.ge.s32.totalorder %s20_s25, 8   ;;  %s1682_s14 = sld [smem:[#allocation22_spill]] }
 0x17b   : > { %s1683_s5 = sld [smem:[#allocation15_spill]]  ;;  %s1690_s12 = smov %s1143_s13 }
 0x17c   : > { %s1684_s17 = sld [smem:[#allocation20_spill]]  ;;  %s1692_s15 = smov %s1155_s16 }
 0x17d   : > { %s1685_s29 = sld [smem:[#allocation16_spill]]  ;;  %s1694_s18 = smov %s1167_s19 }
 0x17e   : > { %s1686_s20 = sld [smem:[#allocation21_spill]]  ;;  %s1696_s21 = smov %s1183_s23 }
 0x17f   : > { %s1687_s22 = sld [smem:[#allocation17_spill]]  ;;  %s1691_s13 = smov %s1681_s9 }
 0x180   : > { %s1688_s8 = sld [smem:[#allocation18_spill]] }
 0x181   : > { %s1689_s24 = sld [smem:[#allocation19_spill]]  ;;  %s1693_s16 = smov %s1683_s5 }
 0x182   :  { %19 = sbr.rel (!%p1597_p2) target bundleno = 14 (0xe), region = 99 }
 0x183   : > { %s1695_s19 = smov %s1685_s29 }
 0x186   : > { %s1697_s23 = smov %s1688_s8 }
 0x187   :  { %663 = vsyncpa [#allocation4], 1 }
 0x188   :  { %665 = vsyncpa [#allocation4 + $0x1], 1 }
 0x189   :  { %666 = vsyncpa [#allocation7], 1 }
 0x18a   :  { %668 = vsyncpa [#allocation7 + $0x1], 1 }
 0x18b   :  { %669 = vsyncpa [#allocation5], 1 }
 0x18c   :  { %671 = vsyncpa [#allocation5 + $0x1], 1 }

</bundles_post_ra>
